<compile_context>
chip_gen: v6e
topology: v6e:2x2x1
jax: 0.10.0
libtpu: 0.0.40
codegen_flags: <defaults>
</compile_context>

<pallas_src>
import jax
import jax.numpy as jnp
from jax.experimental import pallas as pl
from jax.experimental.pallas import tpu as pltpu

_NEG_PAD = -1e30  # bias for padded vocab columns (masked out, then sliced off)


def cbow_kernel(ids_ref,                       # scalar-prefetch: (seq,) int32 in SMEM
                emb_hbm,                       # (V, D) f32, stays in HBM (pl.ANY)
                w1_ref, b1_ref, b2_ref,        # resident: (D, H), (1, H), (nj, TV)
                w2_ref,                        # streamed per vocab tile: (H, TV)
                out_ref,                       # resident: (nj, TV) raw-logit rows
                emb_buf, h_sc, m_sc, s_sc,     # VMEM scratch
                emb_sem):                      # (seq,) DMA semaphores
    j = pl.program_id(0)
    nj = pl.num_programs(0)
    seq = emb_buf.shape[0]

    @pl.when(j == 0)
    def _init():
        # --- fused embedding gather + context sum ----------------------------
        # Fetch only the `seq` context rows of the table from HBM (row DMAs),
        # then sum them.  padding_idx row is zero in the table, so it
        # contributes 0, matching nn.Embedding(padding_idx=...) semantics.
        copies = []
        for t in range(seq):                       # static unroll; scalar reads
            row = ids_ref[t]                       # happen before any .wait()
            cp = pltpu.make_async_copy(
                emb_hbm.at[pl.ds(row, 1), :],
                emb_buf.at[pl.ds(t, 1), :],
                emb_sem.at[t])
            cp.start()
            copies.append(cp)
        for cp in copies:
            cp.wait()

        ctx = jnp.sum(emb_buf[...], axis=0, keepdims=True)          # (1, D)

        # --- Linear1 + ReLU, computed once and cached in VMEM ----------------
        h = jnp.dot(ctx, w1_ref[...],
                    preferred_element_type=jnp.float32) + b1_ref[...]
        h_sc[...] = jnp.maximum(h, 0.0)

        # --- init online log-softmax state ------------------------------------
        m_sc[...] = jnp.full(m_sc.shape, -jnp.inf, m_sc.dtype)
        s_sc[...] = jnp.zeros(s_sc.shape, s_sc.dtype)

    # --- Linear2 for this vocab tile (W2 may be bf16; f32 accumulation) -------
    h = h_sc[...].astype(w2_ref.dtype)
    logits = (jnp.dot(h, w2_ref[...], preferred_element_type=jnp.float32)
              + b2_ref[pl.ds(j, 1), :])                              # (1, TV)

    # Stash raw logits into row j of the resident output block (lane-dense).
    out_ref[pl.ds(j, 1), :] = logits

    # --- online (flash-style) max / sum-exp across vocab tiles -----------------
    m_prev = m_sc[...]
    m_new = jnp.maximum(m_prev, jnp.max(logits, axis=-1, keepdims=True))
    s_sc[...] = (s_sc[...] * jnp.exp(m_prev - m_new)
                 + jnp.sum(jnp.exp(logits - m_new), axis=-1, keepdims=True))
    m_sc[...] = m_new

    @pl.when(j == nj - 1)
    def _finalize():
        lse = m_sc[...] + jnp.log(s_sc[...])       # (1, 1)
        out_ref[...] = out_ref[...] - lse          # log_softmax over full vocab


def cbow_forward(inputs, emb_table, w1, b1, w2, b2, *, tv=None,
                 compute_dtype=jnp.bfloat16):
    """inputs: int32 (seq,) context word ids; returns (1, vocab) log-probs."""
    vocab, d = emb_table.shape
    d2, h = w1.shape
    assert d2 == d
    h2, v = w2.shape
    assert h2 == h and b2.shape[-1] == v
    seq = inputs.shape[0]

    # ---- vocab tile size & padding -------------------------------------------
    # Small vocab: single tile (one grid step, no per-step overhead).
    # Large vocab: 512-2048 lane tiles; pad V to a multiple of the tile.
    if tv is None:
        if v <= 4096:
            tv = v
        elif v % 2048 == 0:
            tv = 2048
        elif v % 1024 == 0:
            tv = 1024
        else:
            tv = 512
    nj = -(-v // tv)
    v_pad = nj * tv
    if nj > 1:
        assert tv % 128 == 0, "multi-tile vocab tile must be lane-aligned"

    ids = inputs.astype(jnp.int32)
    emb_f = emb_table.astype(jnp.float32)          # stays in HBM; rows DMA'd only
    w1_f = w1.astype(jnp.float32)
    b1_2d = b1.reshape(1, h).astype(jnp.float32)

    w2_c = w2.astype(compute_dtype)                # streamed: halve bytes via bf16
    b2_f = b2.reshape(1, v).astype(jnp.float32)
    if v_pad != v:
        w2_c = jnp.pad(w2_c, ((0, 0), (0, v_pad - v)))
        b2_f = jnp.pad(b2_f, ((0, 0), (0, v_pad - v)), constant_values=_NEG_PAD)
    b2_2d = b2_f.reshape(nj, tv)                   # row j = vocab cols [j*tv, (j+1)*tv)

    # ---- VMEM budget (safe on v5e/v6e and v7x's 64 MiB) ------------------------
    w2_item = jnp.dtype(compute_dtype).itemsize
    vmem_est = (2 * d * h * 4 + 2 * h * 4 + 2 * nj * tv * 4     # W1, b1, b2 (worst case 2x)
                + 2 * h * tv * w2_item                          # streamed W2, double buffered
                + 2 * nj * tv * 4                               # resident output
                + seq * max(d, 128) * 4 + h * 4 + 1024)         # scratch
    vmem_limit = int(min(max(2 * vmem_est, 32 << 20), 48 << 20))

    flops = 2 * (seq * d + d * h + h * v_pad)
    bytes_accessed = (4 * (seq * d + d * h + h + nj * tv)       # gathered rows, W1, b1, b2
                      + w2_item * h * v_pad + 4 * v_pad)        # W2 stream + output
    transcendentals = v_pad + nj + 1

    out = pl.pallas_call(
        cbow_kernel,
        out_shape=jax.ShapeDtypeStruct((nj, tv), jnp.float32),
        grid_spec=pltpu.PrefetchScalarGridSpec(
            num_scalar_prefetch=1,
            grid=(nj,),
            in_specs=[
                pl.BlockSpec(memory_space=pl.ANY),               # emb table in HBM
                pl.BlockSpec((d, h), lambda j, ids: (0, 0)),     # W1 (resident)
                pl.BlockSpec((1, h), lambda j, ids: (0, 0)),     # b1 (resident)
                pl.BlockSpec((nj, tv), lambda j, ids: (0, 0)),   # b2 (resident, row-sliced)
                pl.BlockSpec((h, tv), lambda j, ids: (0, j)),    # W2 tile (streamed)
            ],
            out_specs=pl.BlockSpec((nj, tv), lambda j, ids: (0, 0)),   # resident
            scratch_shapes=[
                pltpu.VMEM((seq, d), jnp.float32),   # gathered embedding rows
                pltpu.VMEM((1, h), jnp.float32),     # cached hidden activations
                pltpu.VMEM((1, 1), jnp.float32),     # running max
                pltpu.VMEM((1, 1), jnp.float32),     # running sum-exp
                pltpu.SemaphoreType.DMA((seq,)),     # per-row gather DMA sems
            ],
        ),
        compiler_params=pltpu.CompilerParams(
            dimension_semantics=("arbitrary",),      # output resident across vocab tiles
            vmem_limit_bytes=vmem_limit,
        ),
        cost_estimate=pl.CostEstimate(
            flops=flops, transcendentals=transcendentals,
            bytes_accessed=bytes_accessed),
    )(ids, emb_f, w1_f, b1_2d, b2_2d, w2_c)

    # Row j of `out` holds vocab columns [j*tv, (j+1)*tv); drop padded columns.
    return out.reshape(1, v_pad)[:, :v]


def reference_forward(inputs, emb_table, w1, b1, w2, b2,
                      compute_dtype=jnp.float32):
    ctx = jnp.sum(jnp.take(emb_table, inputs, axis=0), axis=0, keepdims=True)
    hh = jnp.maximum(ctx @ w1 + b1.reshape(1, -1), 0.0)
    logits = jnp.dot(hh.astype(compute_dtype), w2.astype(compute_dtype),
                     preferred_element_type=jnp.float32) + b2.reshape(1, -1)
    return jax.nn.log_softmax(logits, axis=-1)


if __name__ == "__main__":
    vocab_size = 256
    embedding_dim = 32
    hidden = 128
    padding_idx = 0
    seq = 8  # number of context words

    key = jax.random.PRNGKey(0)
    k_emb, k_w1, k_b1, k_w2, k_b2, k_in = jax.random.split(key, 6)

    emb_table = jax.random.normal(k_emb, (vocab_size, embedding_dim), jnp.float32)
    emb_table = emb_table.at[padding_idx].set(0.0)   # nn.Embedding padding_idx semantics

    w1 = jax.random.normal(k_w1, (embedding_dim, hidden), jnp.float32) * (1.0 / embedding_dim ** 0.5)
    b1 = jax.random.normal(k_b1, (1, hidden), jnp.float32) * 0.01
    w2 = jax.random.normal(k_w2, (hidden, vocab_size), jnp.float32) * (1.0 / hidden ** 0.5)
    b2 = jax.random.normal(k_b2, (1, vocab_size), jnp.float32) * 0.01

    inputs = jax.random.randint(k_in, (seq,), 0, vocab_size, dtype=jnp.int32)

    # 1) f32 path, single vocab tile (tv = V -> one grid step).
    out_f32 = jax.block_until_ready(
        cbow_forward(inputs, emb_table, w1, b1, w2, b2, compute_dtype=jnp.float32))
    ref_f32 = reference_forward(inputs, emb_table, w1, b1, w2, b2)
    assert out_f32.shape == (1, vocab_size)
    assert jnp.allclose(out_f32, ref_f32, atol=5e-4, rtol=5e-4), "f32 mismatch vs reference"

    # 2) default bf16-streamed-W2 path vs a matched bf16 reference.
    out_bf16 = jax.block_until_ready(cbow_forward(inputs, emb_table, w1, b1, w2, b2))
    ref_bf16 = reference_forward(inputs, emb_table, w1, b1, w2, b2,
                                 compute_dtype=jnp.bfloat16)
    assert out_bf16.shape == (1, vocab_size)
    assert jnp.allclose(out_bf16, ref_bf16, atol=2e-3, rtol=2e-3), "bf16 mismatch vs reference"

    # 3) multi-tile streamed path with vocab padding (V=200 -> V_pad=256, 2 tiles).
    v_small = 200
    inputs_s = inputs % v_small
    out_pad = jax.block_until_ready(
        cbow_forward(inputs_s, emb_table[:v_small], w1, b1,
                     w2[:, :v_small], b2[:, :v_small],
                     tv=128, compute_dtype=jnp.float32))
    ref_pad = reference_forward(inputs_s, emb_table[:v_small], w1, b1,
                                w2[:, :v_small], b2[:, :v_small])
    assert out_pad.shape == (1, v_small)
    assert jnp.allclose(out_pad, ref_pad, atol=5e-4, rtol=5e-4), "padded-vocab mismatch"

    print("KERNEL_OK")
</pallas_src>

<mosaic_0001>
module attributes {stable_mosaic.version = 11 : i64} {
  func.func @cbow_kernel(%arg0: i32, %arg1: memref<8xi32, #tpu.memory_space<smem>>, %arg2: memref<256x32xf32, #tpu.memory_space<any>>, %arg3: memref<32x128xf32, #tpu.memory_space<vmem>>, %arg4: memref<1x128xf32, #tpu.memory_space<vmem>>, %arg5: memref<1x256xf32, #tpu.memory_space<vmem>>, %arg6: memref<128x256xf32, #tpu.memory_space<vmem>>, %arg7: memref<1x256xf32, #tpu.memory_space<vmem>>, %arg8: memref<8x32xf32, #tpu.memory_space<vmem>>, %arg9: memref<1x128xf32, #tpu.memory_space<vmem>>, %arg10: memref<1x1xf32, #tpu.memory_space<vmem>>, %arg11: memref<1x1xf32, #tpu.memory_space<vmem>>, %arg12: memref<8x!tpu.dma_semaphore, #tpu.memory_space<semaphore_mem>>) attributes {dimension_semantics = [#tpu.dimension_semantics<arbitrary>], iteration_bounds = array<i64: 1>, scalar_prefetch = 1 : i64, scratch_operands = 5 : i64, tpu.core_type = #tpu.core_type<tc>, window_params = [{}, {pipeline_mode = #tpu.pipeline_mode<synchronous>, transform_indices = @transform_1, window_bounds = array<i64: 32, 128>}, {pipeline_mode = #tpu.pipeline_mode<synchronous>, transform_indices = @transform_2, window_bounds = array<i64: 1, 128>}, {pipeline_mode = #tpu.pipeline_mode<synchronous>, transform_indices = @transform_3, window_bounds = array<i64: 1, 256>}, {transform_indices = @transform_4, window_bounds = array<i64: 128, 256>}, {pipeline_mode = #tpu.pipeline_mode<synchronous>, transform_indices = @transform_5, window_bounds = array<i64: 1, 256>}]} {
    %c0_i32 = arith.constant 0 : i32
    %0 = arith.cmpi eq, %arg0, %c0_i32 : i32
    %1 = arith.extui %0 : i1 to i32
    %c0_i32_0 = arith.constant 0 : i32
    %2 = arith.cmpi ne, %1, %c0_i32_0 : i32
    scf.if %2 {
      %c0_18 = arith.constant 0 : index
      %30 = memref.load %arg1[%c0_18] : memref<8xi32, #tpu.memory_space<smem>>
      %c0_i32_19 = arith.constant 0 : i32
      %c0_i32_20 = arith.constant 0 : i32
      %31 = tpu.memref_slice %arg2[%30, %c0_i32_20] : memref<256x32xf32, #tpu.memory_space<any>> -> memref<1x32xf32, #tpu.memory_space<any>>
      %c0_i32_21 = arith.constant 0 : i32
      %c0_i32_22 = arith.constant 0 : i32
      %32 = tpu.memref_slice %arg8[%c0_i32_21, %c0_i32_22] : memref<8x32xf32, #tpu.memory_space<vmem>> -> memref<1x32xf32, #tpu.memory_space<vmem>>
      %33 = tpu.memref_slice %arg12[%c0_i32_19] : memref<8x!tpu.dma_semaphore, #tpu.memory_space<semaphore_mem>> -> memref<1x!tpu.dma_semaphore, #tpu.memory_space<semaphore_mem>>
      %34 = tpu.memref_squeeze %33 : memref<1x!tpu.dma_semaphore, #tpu.memory_space<semaphore_mem>> -> memref<!tpu.dma_semaphore, #tpu.memory_space<semaphore_mem>>
      tpu.enqueue_dma source(%31 : memref<1x32xf32, #tpu.memory_space<any>>) target(%32 : memref<1x32xf32, #tpu.memory_space<vmem>>) target_semaphore(%34 : memref<!tpu.dma_semaphore, #tpu.memory_space<semaphore_mem>>)
      %c1 = arith.constant 1 : index
      %35 = memref.load %arg1[%c1] : memref<8xi32, #tpu.memory_space<smem>>
      %c1_i32 = arith.constant 1 : i32
      %c0_i32_23 = arith.constant 0 : i32
      %36 = tpu.memref_slice %arg2[%35, %c0_i32_23] : memref<256x32xf32, #tpu.memory_space<any>> -> memref<1x32xf32, #tpu.memory_space<any>>
      %c1_i32_24 = arith.constant 1 : i32
      %c0_i32_25 = arith.constant 0 : i32
      %37 = tpu.memref_slice %arg8[%c1_i32_24, %c0_i32_25] : memref<8x32xf32, #tpu.memory_space<vmem>> -> memref<1x32xf32, #tpu.memory_space<vmem>>
      %38 = tpu.memref_slice %arg12[%c1_i32] : memref<8x!tpu.dma_semaphore, #tpu.memory_space<semaphore_mem>> -> memref<1x!tpu.dma_semaphore, #tpu.memory_space<semaphore_mem>>
      %39 = tpu.memref_squeeze %38 : memref<1x!tpu.dma_semaphore, #tpu.memory_space<semaphore_mem>> -> memref<!tpu.dma_semaphore, #tpu.memory_space<semaphore_mem>>
      tpu.enqueue_dma source(%36 : memref<1x32xf32, #tpu.memory_space<any>>) target(%37 : memref<1x32xf32, #tpu.memory_space<vmem>>) target_semaphore(%39 : memref<!tpu.dma_semaphore, #tpu.memory_space<semaphore_mem>>)
      %c2 = arith.constant 2 : index
      %40 = memref.load %arg1[%c2] : memref<8xi32, #tpu.memory_space<smem>>
      %c2_i32 = arith.constant 2 : i32
      %c0_i32_26 = arith.constant 0 : i32
      %41 = tpu.memref_slice %arg2[%40, %c0_i32_26] : memref<256x32xf32, #tpu.memory_space<any>> -> memref<1x32xf32, #tpu.memory_space<any>>
      %c2_i32_27 = arith.constant 2 : i32
      %c0_i32_28 = arith.constant 0 : i32
      %42 = tpu.memref_slice %arg8[%c2_i32_27, %c0_i32_28] : memref<8x32xf32, #tpu.memory_space<vmem>> -> memref<1x32xf32, #tpu.memory_space<vmem>>
      %43 = tpu.memref_slice %arg12[%c2_i32] : memref<8x!tpu.dma_semaphore, #tpu.memory_space<semaphore_mem>> -> memref<1x!tpu.dma_semaphore, #tpu.memory_space<semaphore_mem>>
      %44 = tpu.memref_squeeze %43 : memref<1x!tpu.dma_semaphore, #tpu.memory_space<semaphore_mem>> -> memref<!tpu.dma_semaphore, #tpu.memory_space<semaphore_mem>>
      tpu.enqueue_dma source(%41 : memref<1x32xf32, #tpu.memory_space<any>>) target(%42 : memref<1x32xf32, #tpu.memory_space<vmem>>) target_semaphore(%44 : memref<!tpu.dma_semaphore, #tpu.memory_space<semaphore_mem>>)
      %c3 = arith.constant 3 : index
      %45 = memref.load %arg1[%c3] : memref<8xi32, #tpu.memory_space<smem>>
      %c3_i32 = arith.constant 3 : i32
      %c0_i32_29 = arith.constant 0 : i32
      %46 = tpu.memref_slice %arg2[%45, %c0_i32_29] : memref<256x32xf32, #tpu.memory_space<any>> -> memref<1x32xf32, #tpu.memory_space<any>>
      %c3_i32_30 = arith.constant 3 : i32
      %c0_i32_31 = arith.constant 0 : i32
      %47 = tpu.memref_slice %arg8[%c3_i32_30, %c0_i32_31] : memref<8x32xf32, #tpu.memory_space<vmem>> -> memref<1x32xf32, #tpu.memory_space<vmem>>
      %48 = tpu.memref_slice %arg12[%c3_i32] : memref<8x!tpu.dma_semaphore, #tpu.memory_space<semaphore_mem>> -> memref<1x!tpu.dma_semaphore, #tpu.memory_space<semaphore_mem>>
      %49 = tpu.memref_squeeze %48 : memref<1x!tpu.dma_semaphore, #tpu.memory_space<semaphore_mem>> -> memref<!tpu.dma_semaphore, #tpu.memory_space<semaphore_mem>>
      tpu.enqueue_dma source(%46 : memref<1x32xf32, #tpu.memory_space<any>>) target(%47 : memref<1x32xf32, #tpu.memory_space<vmem>>) target_semaphore(%49 : memref<!tpu.dma_semaphore, #tpu.memory_space<semaphore_mem>>)
      %c4 = arith.constant 4 : index
      %50 = memref.load %arg1[%c4] : memref<8xi32, #tpu.memory_space<smem>>
      %c4_i32 = arith.constant 4 : i32
      %c0_i32_32 = arith.constant 0 : i32
      %51 = tpu.memref_slice %arg2[%50, %c0_i32_32] : memref<256x32xf32, #tpu.memory_space<any>> -> memref<1x32xf32, #tpu.memory_space<any>>
      %c4_i32_33 = arith.constant 4 : i32
      %c0_i32_34 = arith.constant 0 : i32
      %52 = tpu.memref_slice %arg8[%c4_i32_33, %c0_i32_34] : memref<8x32xf32, #tpu.memory_space<vmem>> -> memref<1x32xf32, #tpu.memory_space<vmem>>
      %53 = tpu.memref_slice %arg12[%c4_i32] : memref<8x!tpu.dma_semaphore, #tpu.memory_space<semaphore_mem>> -> memref<1x!tpu.dma_semaphore, #tpu.memory_space<semaphore_mem>>
      %54 = tpu.memref_squeeze %53 : memref<1x!tpu.dma_semaphore, #tpu.memory_space<semaphore_mem>> -> memref<!tpu.dma_semaphore, #tpu.memory_space<semaphore_mem>>
      tpu.enqueue_dma source(%51 : memref<1x32xf32, #tpu.memory_space<any>>) target(%52 : memref<1x32xf32, #tpu.memory_space<vmem>>) target_semaphore(%54 : memref<!tpu.dma_semaphore, #tpu.memory_space<semaphore_mem>>)
      %c5 = arith.constant 5 : index
      %55 = memref.load %arg1[%c5] : memref<8xi32, #tpu.memory_space<smem>>
      %c5_i32 = arith.constant 5 : i32
      %c0_i32_35 = arith.constant 0 : i32
      %56 = tpu.memref_slice %arg2[%55, %c0_i32_35] : memref<256x32xf32, #tpu.memory_space<any>> -> memref<1x32xf32, #tpu.memory_space<any>>
      %c5_i32_36 = arith.constant 5 : i32
      %c0_i32_37 = arith.constant 0 : i32
      %57 = tpu.memref_slice %arg8[%c5_i32_36, %c0_i32_37] : memref<8x32xf32, #tpu.memory_space<vmem>> -> memref<1x32xf32, #tpu.memory_space<vmem>>
      %58 = tpu.memref_slice %arg12[%c5_i32] : memref<8x!tpu.dma_semaphore, #tpu.memory_space<semaphore_mem>> -> memref<1x!tpu.dma_semaphore, #tpu.memory_space<semaphore_mem>>
      %59 = tpu.memref_squeeze %58 : memref<1x!tpu.dma_semaphore, #tpu.memory_space<semaphore_mem>> -> memref<!tpu.dma_semaphore, #tpu.memory_space<semaphore_mem>>
      tpu.enqueue_dma source(%56 : memref<1x32xf32, #tpu.memory_space<any>>) target(%57 : memref<1x32xf32, #tpu.memory_space<vmem>>) target_semaphore(%59 : memref<!tpu.dma_semaphore, #tpu.memory_space<semaphore_mem>>)
      %c6 = arith.constant 6 : index
      %60 = memref.load %arg1[%c6] : memref<8xi32, #tpu.memory_space<smem>>
      %c6_i32 = arith.constant 6 : i32
      %c0_i32_38 = arith.constant 0 : i32
      %61 = tpu.memref_slice %arg2[%60, %c0_i32_38] : memref<256x32xf32, #tpu.memory_space<any>> -> memref<1x32xf32, #tpu.memory_space<any>>
      %c6_i32_39 = arith.constant 6 : i32
      %c0_i32_40 = arith.constant 0 : i32
      %62 = tpu.memref_slice %arg8[%c6_i32_39, %c0_i32_40] : memref<8x32xf32, #tpu.memory_space<vmem>> -> memref<1x32xf32, #tpu.memory_space<vmem>>
      %63 = tpu.memref_slice %arg12[%c6_i32] : memref<8x!tpu.dma_semaphore, #tpu.memory_space<semaphore_mem>> -> memref<1x!tpu.dma_semaphore, #tpu.memory_space<semaphore_mem>>
      %64 = tpu.memref_squeeze %63 : memref<1x!tpu.dma_semaphore, #tpu.memory_space<semaphore_mem>> -> memref<!tpu.dma_semaphore, #tpu.memory_space<semaphore_mem>>
      tpu.enqueue_dma source(%61 : memref<1x32xf32, #tpu.memory_space<any>>) target(%62 : memref<1x32xf32, #tpu.memory_space<vmem>>) target_semaphore(%64 : memref<!tpu.dma_semaphore, #tpu.memory_space<semaphore_mem>>)
      %c7 = arith.constant 7 : index
      %65 = memref.load %arg1[%c7] : memref<8xi32, #tpu.memory_space<smem>>
      %c7_i32 = arith.constant 7 : i32
      %c0_i32_41 = arith.constant 0 : i32
      %66 = tpu.memref_slice %arg2[%65, %c0_i32_41] : memref<256x32xf32, #tpu.memory_space<any>> -> memref<1x32xf32, #tpu.memory_space<any>>
      %c7_i32_42 = arith.constant 7 : i32
      %c0_i32_43 = arith.constant 0 : i32
      %67 = tpu.memref_slice %arg8[%c7_i32_42, %c0_i32_43] : memref<8x32xf32, #tpu.memory_space<vmem>> -> memref<1x32xf32, #tpu.memory_space<vmem>>
      %68 = tpu.memref_slice %arg12[%c7_i32] : memref<8x!tpu.dma_semaphore, #tpu.memory_space<semaphore_mem>> -> memref<1x!tpu.dma_semaphore, #tpu.memory_space<semaphore_mem>>
      %69 = tpu.memref_squeeze %68 : memref<1x!tpu.dma_semaphore, #tpu.memory_space<semaphore_mem>> -> memref<!tpu.dma_semaphore, #tpu.memory_space<semaphore_mem>>
      tpu.enqueue_dma source(%66 : memref<1x32xf32, #tpu.memory_space<any>>) target(%67 : memref<1x32xf32, #tpu.memory_space<vmem>>) target_semaphore(%69 : memref<!tpu.dma_semaphore, #tpu.memory_space<semaphore_mem>>)
      %c0_i32_44 = arith.constant 0 : i32
      %c0_i32_45 = arith.constant 0 : i32
      %70 = tpu.memref_slice %arg2[%30, %c0_i32_45] : memref<256x32xf32, #tpu.memory_space<any>> -> memref<1x32xf32, #tpu.memory_space<any>>
      %c0_i32_46 = arith.constant 0 : i32
      %c0_i32_47 = arith.constant 0 : i32
      %71 = tpu.memref_slice %arg8[%c0_i32_46, %c0_i32_47] : memref<8x32xf32, #tpu.memory_space<vmem>> -> memref<1x32xf32, #tpu.memory_space<vmem>>
      %72 = tpu.memref_slice %arg12[%c0_i32_44] : memref<8x!tpu.dma_semaphore, #tpu.memory_space<semaphore_mem>> -> memref<1x!tpu.dma_semaphore, #tpu.memory_space<semaphore_mem>>
      %73 = tpu.memref_squeeze %72 : memref<1x!tpu.dma_semaphore, #tpu.memory_space<semaphore_mem>> -> memref<!tpu.dma_semaphore, #tpu.memory_space<semaphore_mem>>
      tpu.wait_dma2 semaphore(%73 : memref<!tpu.dma_semaphore, #tpu.memory_space<semaphore_mem>>) src(%70 : memref<1x32xf32, #tpu.memory_space<any>>) dst(%71 : memref<1x32xf32, #tpu.memory_space<vmem>>)
      %c1_i32_48 = arith.constant 1 : i32
      %c0_i32_49 = arith.constant 0 : i32
      %74 = tpu.memref_slice %arg2[%35, %c0_i32_49] : memref<256x32xf32, #tpu.memory_space<any>> -> memref<1x32xf32, #tpu.memory_space<any>>
      %c1_i32_50 = arith.constant 1 : i32
      %c0_i32_51 = arith.constant 0 : i32
      %75 = tpu.memref_slice %arg8[%c1_i32_50, %c0_i32_51] : memref<8x32xf32, #tpu.memory_space<vmem>> -> memref<1x32xf32, #tpu.memory_space<vmem>>
      %76 = tpu.memref_slice %arg12[%c1_i32_48] : memref<8x!tpu.dma_semaphore, #tpu.memory_space<semaphore_mem>> -> memref<1x!tpu.dma_semaphore, #tpu.memory_space<semaphore_mem>>
      %77 = tpu.memref_squeeze %76 : memref<1x!tpu.dma_semaphore, #tpu.memory_space<semaphore_mem>> -> memref<!tpu.dma_semaphore, #tpu.memory_space<semaphore_mem>>
      tpu.wait_dma2 semaphore(%77 : memref<!tpu.dma_semaphore, #tpu.memory_space<semaphore_mem>>) src(%74 : memref<1x32xf32, #tpu.memory_space<any>>) dst(%75 : memref<1x32xf32, #tpu.memory_space<vmem>>)
      %c2_i32_52 = arith.constant 2 : i32
      %c0_i32_53 = arith.constant 0 : i32
      %78 = tpu.memref_slice %arg2[%40, %c0_i32_53] : memref<256x32xf32, #tpu.memory_space<any>> -> memref<1x32xf32, #tpu.memory_space<any>>
      %c2_i32_54 = arith.constant 2 : i32
      %c0_i32_55 = arith.constant 0 : i32
      %79 = tpu.memref_slice %arg8[%c2_i32_54, %c0_i32_55] : memref<8x32xf32, #tpu.memory_space<vmem>> -> memref<1x32xf32, #tpu.memory_space<vmem>>
      %80 = tpu.memref_slice %arg12[%c2_i32_52] : memref<8x!tpu.dma_semaphore, #tpu.memory_space<semaphore_mem>> -> memref<1x!tpu.dma_semaphore, #tpu.memory_space<semaphore_mem>>
      %81 = tpu.memref_squeeze %80 : memref<1x!tpu.dma_semaphore, #tpu.memory_space<semaphore_mem>> -> memref<!tpu.dma_semaphore, #tpu.memory_space<semaphore_mem>>
      tpu.wait_dma2 semaphore(%81 : memref<!tpu.dma_semaphore, #tpu.memory_space<semaphore_mem>>) src(%78 : memref<1x32xf32, #tpu.memory_space<any>>) dst(%79 : memref<1x32xf32, #tpu.memory_space<vmem>>)
      %c3_i32_56 = arith.constant 3 : i32
      %c0_i32_57 = arith.constant 0 : i32
      %82 = tpu.memref_slice %arg2[%45, %c0_i32_57] : memref<256x32xf32, #tpu.memory_space<any>> -> memref<1x32xf32, #tpu.memory_space<any>>
      %c3_i32_58 = arith.constant 3 : i32
      %c0_i32_59 = arith.constant 0 : i32
      %83 = tpu.memref_slice %arg8[%c3_i32_58, %c0_i32_59] : memref<8x32xf32, #tpu.memory_space<vmem>> -> memref<1x32xf32, #tpu.memory_space<vmem>>
      %84 = tpu.memref_slice %arg12[%c3_i32_56] : memref<8x!tpu.dma_semaphore, #tpu.memory_space<semaphore_mem>> -> memref<1x!tpu.dma_semaphore, #tpu.memory_space<semaphore_mem>>
      %85 = tpu.memref_squeeze %84 : memref<1x!tpu.dma_semaphore, #tpu.memory_space<semaphore_mem>> -> memref<!tpu.dma_semaphore, #tpu.memory_space<semaphore_mem>>
      tpu.wait_dma2 semaphore(%85 : memref<!tpu.dma_semaphore, #tpu.memory_space<semaphore_mem>>) src(%82 : memref<1x32xf32, #tpu.memory_space<any>>) dst(%83 : memref<1x32xf32, #tpu.memory_space<vmem>>)
      %c4_i32_60 = arith.constant 4 : i32
      %c0_i32_61 = arith.constant 0 : i32
      %86 = tpu.memref_slice %arg2[%50, %c0_i32_61] : memref<256x32xf32, #tpu.memory_space<any>> -> memref<1x32xf32, #tpu.memory_space<any>>
      %c4_i32_62 = arith.constant 4 : i32
      %c0_i32_63 = arith.constant 0 : i32
      %87 = tpu.memref_slice %arg8[%c4_i32_62, %c0_i32_63] : memref<8x32xf32, #tpu.memory_space<vmem>> -> memref<1x32xf32, #tpu.memory_space<vmem>>
      %88 = tpu.memref_slice %arg12[%c4_i32_60] : memref<8x!tpu.dma_semaphore, #tpu.memory_space<semaphore_mem>> -> memref<1x!tpu.dma_semaphore, #tpu.memory_space<semaphore_mem>>
      %89 = tpu.memref_squeeze %88 : memref<1x!tpu.dma_semaphore, #tpu.memory_space<semaphore_mem>> -> memref<!tpu.dma_semaphore, #tpu.memory_space<semaphore_mem>>
      tpu.wait_dma2 semaphore(%89 : memref<!tpu.dma_semaphore, #tpu.memory_space<semaphore_mem>>) src(%86 : memref<1x32xf32, #tpu.memory_space<any>>) dst(%87 : memref<1x32xf32, #tpu.memory_space<vmem>>)
      %c5_i32_64 = arith.constant 5 : i32
      %c0_i32_65 = arith.constant 0 : i32
      %90 = tpu.memref_slice %arg2[%55, %c0_i32_65] : memref<256x32xf32, #tpu.memory_space<any>> -> memref<1x32xf32, #tpu.memory_space<any>>
      %c5_i32_66 = arith.constant 5 : i32
      %c0_i32_67 = arith.constant 0 : i32
      %91 = tpu.memref_slice %arg8[%c5_i32_66, %c0_i32_67] : memref<8x32xf32, #tpu.memory_space<vmem>> -> memref<1x32xf32, #tpu.memory_space<vmem>>
      %92 = tpu.memref_slice %arg12[%c5_i32_64] : memref<8x!tpu.dma_semaphore, #tpu.memory_space<semaphore_mem>> -> memref<1x!tpu.dma_semaphore, #tpu.memory_space<semaphore_mem>>
      %93 = tpu.memref_squeeze %92 : memref<1x!tpu.dma_semaphore, #tpu.memory_space<semaphore_mem>> -> memref<!tpu.dma_semaphore, #tpu.memory_space<semaphore_mem>>
      tpu.wait_dma2 semaphore(%93 : memref<!tpu.dma_semaphore, #tpu.memory_space<semaphore_mem>>) src(%90 : memref<1x32xf32, #tpu.memory_space<any>>) dst(%91 : memref<1x32xf32, #tpu.memory_space<vmem>>)
      %c6_i32_68 = arith.constant 6 : i32
      %c0_i32_69 = arith.constant 0 : i32
      %94 = tpu.memref_slice %arg2[%60, %c0_i32_69] : memref<256x32xf32, #tpu.memory_space<any>> -> memref<1x32xf32, #tpu.memory_space<any>>
      %c6_i32_70 = arith.constant 6 : i32
      %c0_i32_71 = arith.constant 0 : i32
      %95 = tpu.memref_slice %arg8[%c6_i32_70, %c0_i32_71] : memref<8x32xf32, #tpu.memory_space<vmem>> -> memref<1x32xf32, #tpu.memory_space<vmem>>
      %96 = tpu.memref_slice %arg12[%c6_i32_68] : memref<8x!tpu.dma_semaphore, #tpu.memory_space<semaphore_mem>> -> memref<1x!tpu.dma_semaphore, #tpu.memory_space<semaphore_mem>>
      %97 = tpu.memref_squeeze %96 : memref<1x!tpu.dma_semaphore, #tpu.memory_space<semaphore_mem>> -> memref<!tpu.dma_semaphore, #tpu.memory_space<semaphore_mem>>
      tpu.wait_dma2 semaphore(%97 : memref<!tpu.dma_semaphore, #tpu.memory_space<semaphore_mem>>) src(%94 : memref<1x32xf32, #tpu.memory_space<any>>) dst(%95 : memref<1x32xf32, #tpu.memory_space<vmem>>)
      %c7_i32_72 = arith.constant 7 : i32
      %c0_i32_73 = arith.constant 0 : i32
      %98 = tpu.memref_slice %arg2[%65, %c0_i32_73] : memref<256x32xf32, #tpu.memory_space<any>> -> memref<1x32xf32, #tpu.memory_space<any>>
      %c7_i32_74 = arith.constant 7 : i32
      %c0_i32_75 = arith.constant 0 : i32
      %99 = tpu.memref_slice %arg8[%c7_i32_74, %c0_i32_75] : memref<8x32xf32, #tpu.memory_space<vmem>> -> memref<1x32xf32, #tpu.memory_space<vmem>>
      %100 = tpu.memref_slice %arg12[%c7_i32_72] : memref<8x!tpu.dma_semaphore, #tpu.memory_space<semaphore_mem>> -> memref<1x!tpu.dma_semaphore, #tpu.memory_space<semaphore_mem>>
      %101 = tpu.memref_squeeze %100 : memref<1x!tpu.dma_semaphore, #tpu.memory_space<semaphore_mem>> -> memref<!tpu.dma_semaphore, #tpu.memory_space<semaphore_mem>>
      tpu.wait_dma2 semaphore(%101 : memref<!tpu.dma_semaphore, #tpu.memory_space<semaphore_mem>>) src(%98 : memref<1x32xf32, #tpu.memory_space<any>>) dst(%99 : memref<1x32xf32, #tpu.memory_space<vmem>>)
      %c0_76 = arith.constant 0 : index
      %c0_77 = arith.constant 0 : index
      %102 = vector.load %arg8[%c0_76, %c0_77] : memref<8x32xf32, #tpu.memory_space<vmem>>, vector<8x32xf32>
      %cst_78 = arith.constant dense<0.000000e+00> : vector<32xf32>
      %103 = vector.multi_reduction <add>, %102, %cst_78 [0] : vector<8x32xf32> to vector<32xf32>
      %104 = vector.shape_cast %103 : vector<32xf32> to vector<1x32xf32>
      %c0_79 = arith.constant 0 : index
      %c0_80 = arith.constant 0 : index
      %105 = vector.load %arg3[%c0_79, %c0_80] : memref<32x128xf32, #tpu.memory_space<vmem>>, vector<32x128xf32>
      %cst_81 = arith.constant dense<0.000000e+00> : vector<1x128xf32>
      %106 = tpu.matmul %104, %105, %cst_81 {dimension_numbers = #tpu.dot_dimension_numbers<[1], [0], [0], [1], [0, 0, 1, 1], [], []>} : vector<1x32xf32>, vector<32x128xf32>, vector<1x128xf32> -> vector<1x128xf32>
      %c0_82 = arith.constant 0 : index
      %c0_83 = arith.constant 0 : index
      %107 = vector.load %arg4[%c0_82, %c0_83] : memref<1x128xf32, #tpu.memory_space<vmem>>, vector<1x128xf32>
      %108 = arith.addf %106, %107 : vector<1x128xf32>
      %cst_84 = arith.constant 0.000000e+00 : f32
      %109 = vector.broadcast %cst_84 : f32 to vector<1x128xf32>
      %110 = arith.maximumf %108, %109 : vector<1x128xf32>
      %c0_85 = arith.constant 0 : index
      %c0_86 = arith.constant 0 : index
      %111 = vector.load %arg9[%c0_85, %c0_86] : memref<1x128xf32, #tpu.memory_space<vmem>>, vector<1x128xf32>
      tpu.vector_store %arg9[%c0_85, %c0_86], %110 {strides = array<i32>} : memref<1x128xf32, #tpu.memory_space<vmem>>, vector<1x128xf32>,
      %cst_87 = arith.constant 0xFF800000 : f32
      %112 = vector.broadcast %cst_87 : f32 to vector<1x1xf32>
      %c0_88 = arith.constant 0 : index
      %c0_89 = arith.constant 0 : index
      %113 = vector.load %arg10[%c0_88, %c0_89] : memref<1x1xf32, #tpu.memory_space<vmem>>, vector<1x1xf32>
      tpu.vector_store %arg10[%c0_88, %c0_89], %112 {strides = array<i32>} : memref<1x1xf32, #tpu.memory_space<vmem>>, vector<1x1xf32>,
      %cst_90 = arith.constant 0.000000e+00 : f32
      %114 = vector.broadcast %cst_90 : f32 to vector<1x1xf32>
      %c0_91 = arith.constant 0 : index
      %c0_92 = arith.constant 0 : index
      %115 = vector.load %arg11[%c0_91, %c0_92] : memref<1x1xf32, #tpu.memory_space<vmem>>, vector<1x1xf32>
      tpu.vector_store %arg11[%c0_91, %c0_92], %114 {strides = array<i32>} : memref<1x1xf32, #tpu.memory_space<vmem>>, vector<1x1xf32>,
    } else {
    }
    %c0 = arith.constant 0 : index
    %c0_1 = arith.constant 0 : index
    %3 = vector.load %arg9[%c0, %c0_1] : memref<1x128xf32, #tpu.memory_space<vmem>>, vector<1x128xf32>
    %c0_2 = arith.constant 0 : index
    %c0_3 = arith.constant 0 : index
    %4 = vector.load %arg6[%c0_2, %c0_3] : memref<128x256xf32, #tpu.memory_space<vmem>>, vector<128x256xf32>
    %cst = arith.constant dense<0.000000e+00> : vector<1x256xf32>
    %5 = tpu.matmul %3, %4, %cst {dimension_numbers = #tpu.dot_dimension_numbers<[1], [0], [0], [1], [0, 0, 1, 1], [], []>} : vector<1x128xf32>, vector<128x256xf32>, vector<1x256xf32> -> vector<1x256xf32>
    %6 = arith.index_cast %arg0 : i32 to index
    %c0_4 = arith.constant 0 : index
    %7 = vector.load %arg5[%6, %c0_4] : memref<1x256xf32, #tpu.memory_space<vmem>>, vector<1x256xf32>
    %8 = arith.addf %5, %7 : vector<1x256xf32>
    %9 = arith.index_cast %arg0 : i32 to index
    %c0_5 = arith.constant 0 : index
    %10 = vector.load %arg7[%9, %c0_5] : memref<1x256xf32, #tpu.memory_space<vmem>>, vector<1x256xf32>
    tpu.vector_store %arg7[%9, %c0_5], %8 {strides = array<i32>} : memref<1x256xf32, #tpu.memory_space<vmem>>, vector<1x256xf32>,
    %c0_6 = arith.constant 0 : index
    %c0_7 = arith.constant 0 : index
    %11 = vector.load %arg10[%c0_6, %c0_7] : memref<1x1xf32, #tpu.memory_space<vmem>>, vector<1x1xf32>
    %cst_8 = arith.constant dense<0xFF800000> : vector<1xf32>
    %12 = vector.multi_reduction <maximumf>, %8, %cst_8 [1] : vector<1x256xf32> to vector<1xf32>
    %13 = vector.shape_cast %12 : vector<1xf32> to vector<1x1xf32>
    %14 = arith.maximumf %11, %13 : vector<1x1xf32>
    %c0_9 = arith.constant 0 : index
    %c0_10 = arith.constant 0 : index
    %15 = vector.load %arg11[%c0_9, %c0_10] : memref<1x1xf32, #tpu.memory_space<vmem>>, vector<1x1xf32>
    %16 = arith.subf %11, %14 : vector<1x1xf32>
    %17 = math.exp %16 : vector<1x1xf32>
    %18 = arith.mulf %15, %17 : vector<1x1xf32>
    %19 = vector.broadcast %14 : vector<1x1xf32> to vector<1x256xf32>
    %20 = arith.subf %8, %19 : vector<1x256xf32>
    %21 = math.exp %20 : vector<1x256xf32>
    %cst_11 = arith.constant dense<0.000000e+00> : vector<1xf32>
    %22 = vector.multi_reduction <add>, %21, %cst_11 [1] : vector<1x256xf32> to vector<1xf32>
    %23 = vector.shape_cast %22 : vector<1xf32> to vector<1x1xf32>
    %24 = arith.addf %18, %23 : vector<1x1xf32>
    %c0_12 = arith.constant 0 : index
    %c0_13 = arith.constant 0 : index
    %25 = vector.load %arg11[%c0_12, %c0_13] : memref<1x1xf32, #tpu.memory_space<vmem>>, vector<1x1xf32>
    tpu.vector_store %arg11[%c0_12, %c0_13], %24 {strides = array<i32>} : memref<1x1xf32, #tpu.memory_space<vmem>>, vector<1x1xf32>,
    %c0_14 = arith.constant 0 : index
    %c0_15 = arith.constant 0 : index
    %26 = vector.load %arg10[%c0_14, %c0_15] : memref<1x1xf32, #tpu.memory_space<vmem>>, vector<1x1xf32>
    tpu.vector_store %arg10[%c0_14, %c0_15], %14 {strides = array<i32>} : memref<1x1xf32, #tpu.memory_space<vmem>>, vector<1x1xf32>,
    %c0_i32_16 = arith.constant 0 : i32
    %27 = arith.cmpi eq, %arg0, %c0_i32_16 : i32
    %28 = arith.extui %27 : i1 to i32
    %c0_i32_17 = arith.constant 0 : i32
    %29 = arith.cmpi ne, %28, %c0_i32_17 : i32
    scf.if %29 {
      %c0_18 = arith.constant 0 : index
      %c0_19 = arith.constant 0 : index
      %30 = vector.load %arg10[%c0_18, %c0_19] : memref<1x1xf32, #tpu.memory_space<vmem>>, vector<1x1xf32>
      %c0_20 = arith.constant 0 : index
      %c0_21 = arith.constant 0 : index
      %31 = vector.load %arg11[%c0_20, %c0_21] : memref<1x1xf32, #tpu.memory_space<vmem>>, vector<1x1xf32>
      %32 = math.log %31 : vector<1x1xf32>
      %33 = arith.addf %30, %32 : vector<1x1xf32>
      %c0_22 = arith.constant 0 : index
      %c0_23 = arith.constant 0 : index
      %34 = vector.load %arg7[%c0_22, %c0_23] : memref<1x256xf32, #tpu.memory_space<vmem>>, vector<1x256xf32>
      %35 = vector.broadcast %33 : vector<1x1xf32> to vector<1x256xf32>
      %36 = arith.subf %34, %35 : vector<1x256xf32>
      %c0_24 = arith.constant 0 : index
      %c0_25 = arith.constant 0 : index
      %37 = vector.load %arg7[%c0_24, %c0_25] : memref<1x256xf32, #tpu.memory_space<vmem>>, vector<1x256xf32>
      tpu.vector_store %arg7[%c0_24, %c0_25], %36 {strides = array<i32>} : memref<1x256xf32, #tpu.memory_space<vmem>>, vector<1x256xf32>,
    } else {
    }
    return
  }
  func.func @transform_1(%arg0: i32, %arg1: memref<8xi32, #tpu.memory_space<smem>>) -> (i32, i32) {
    %c0_i32 = arith.constant 0 : i32
    %c0_i32_0 = arith.constant 0 : i32
    %c0_i32_1 = arith.constant 0 : i32
    return %c0_i32, %c0_i32_0 : i32, i32
  }
  func.func @transform_2(%arg0: i32, %arg1: memref<8xi32, #tpu.memory_space<smem>>) -> (i32, i32) {
    %c0_i32 = arith.constant 0 : i32
    %c0_i32_0 = arith.constant 0 : i32
    %c0_i32_1 = arith.constant 0 : i32
    return %c0_i32, %c0_i32_0 : i32, i32
  }
  func.func @transform_3(%arg0: i32, %arg1: memref<8xi32, #tpu.memory_space<smem>>) -> (i32, i32) {
    %c0_i32 = arith.constant 0 : i32
    %c0_i32_0 = arith.constant 0 : i32
    %c0_i32_1 = arith.constant 0 : i32
    return %c0_i32, %c0_i32_0 : i32, i32
  }
  func.func @transform_4(%arg0: i32, %arg1: memref<8xi32, #tpu.memory_space<smem>>) -> (i32, i32) {
    %c0_i32 = arith.constant 0 : i32
    %c0_i32_0 = arith.constant 0 : i32
    return %c0_i32, %arg0 : i32, i32
  }
  func.func @transform_5(%arg0: i32, %arg1: memref<8xi32, #tpu.memory_space<smem>>) -> (i32, i32) {
    %c0_i32 = arith.constant 0 : i32
    %c0_i32_0 = arith.constant 0 : i32
    %c0_i32_1 = arith.constant 0 : i32
    return %c0_i32, %c0_i32_0 : i32, i32
  }
}

</mosaic_0001>

<bundles_post_ra>
// kernel: tpu_custom_call.1
= control target key start
LH: loop header
LB: loop body
LE: loop exit
PB: predicated region body
PF: predicated region fallthrough
CT: control target
= control target key end

     0   :  { %s1217_s0 = inlined_call_operand.vmem [shape: s32[8], index: 0, kind: input, shape index: {}]   ;;  %s1218_s1 = inlined_call_operand.vmem [shape: f32[256,32], index: 1, kind: input, shape index: {}]   ;;  %s1219_s2 = inlined_call_operand.vmem [shape: f32[32,128], index: 2, kind: input, shape index: {}]   ;;  %s1220_s3 = inlined_call_operand.vmem [shape: f32[1,128], index: 3, kind: input, shape index: {}]   ;;  %s1221_s4 = inlined_call_operand.vmem [shape: f32[1,256], index: 4, kind: input, shape index: {}]   ;;  %s1222_s5 = inlined_call_operand.vmem [shape: f32[128,256], index: 5, kind: input, shape index: {}]   ;;  %s1223_s6 = inlined_call_operand.hbm [shape: f32[1,256], index: 6, kind: output, shape index: {}]  }
   0x1   :  { %s11_s23 = sshll.u32 %s1217_s0, 4  ;;  %s12_s23 = int_to_ptr.vmem [resolvable:$true] %s11_s23 }
   0x2   :  { %s949_s24 = scalar_lea.vmem %s12_s23, 16  ;;  %p954_p1 = scmp.lt.s32.totalorder %s12_s23, %s12_s23 }
   0x3   :  { %p950_p0 = scmp.ne.s32.totalorder %s12_s23, %s949_s24  ;;  %p955_p2 = scmp.lt.s32.totalorder %s949_s24, %s949_s24 }
   0x5   :  { %p956_p3 = por %p955_p2, %p954_p1 }
   0x7   :  { %p957_p4 = pnand %p956_p3, %p950_p0 }
   0x9   :  { %960 = shalt.err (!%p957_p4)  }
   0xa   :  { %s1001_s25 = smov [#allocation8]  }
   0xb   :  { %14 = dma.vmem_to_smem %s12_s23, 16, %s1001_s25, [#allocation7] }
   0xc   :  { %981 = dma.done.wait [#allocation7], 16 }
   0xd   :  { %982 = vsyncadd [#allocation7], 4294967280 }
   0xe   :  { %16 = sfence }
   0xf   :  { %17 = vsyncpa [#allocation10], 0  ;;  %s30_s26 = sld [smem:[#allocation8]] }
  0x15   :  { %s31_s29 = scalar_lea.vmem %s1218_s1, %s30_s26 }
  0x16   :  { %v50_v0 = vld [vmem:[%s31_s29] sm:$0x1] }
  0x17   :  { %51 = vst [vmem:[#allocation2] sm:$0x1] %v50_v0 }
  0x18   :  { %77 = vsyncadd [#allocation6], 16  ;;  %s900_s0 = sld [smem:[#allocation8 + $0x1]] }
  0x1e   :  { %s79_s8 = scalar_lea.vmem %s1218_s1, %s900_s0 }
  0x1f   :  { %v100_v1 = vld [vmem:[%s79_s8] sm:$0x1] }
  0x20   :  { %101 = vst [vmem:[#allocation2 + $0x1] sm:$0x1] %v100_v1 }
  0x21   :  { %127 = vsyncadd [#allocation6 + $0x1], 16  ;;  %s901_s9 = sld [smem:[#allocation8 + $0x2]] }
  0x27   :  { %s129_s12 = scalar_lea.vmem %s1218_s1, %s901_s9 }
  0x28   :  { %v150_v2 = vld [vmem:[%s129_s12] sm:$0x1] }
  0x29   :  { %151 = vst [vmem:[#allocation2 + $0x2] sm:$0x1] %v150_v2 }
  0x2a   :  { %177 = vsyncadd [#allocation6 + $0x2], 16  ;;  %s902_s13 = sld [smem:[#allocation8 + $0x3]] }
  0x30   :  { %s179_s16 = scalar_lea.vmem %s1218_s1, %s902_s13 }
  0x31   :  { %v200_v3 = vld [vmem:[%s179_s16] sm:$0x1] }
  0x32   :  { %201 = vst [vmem:[#allocation2 + $0x3] sm:$0x1] %v200_v3 }
  0x33   :  { %227 = vsyncadd [#allocation6 + $0x3], 16  ;;  %s903_s17 = sld [smem:[#allocation8 + $0x4]] }
  0x39   :  { %s229_s20 = scalar_lea.vmem %s1218_s1, %s903_s17 }
  0x3a   :  { %v250_v4 = vld [vmem:[%s229_s20] sm:$0x1] }
  0x3b   :  { %251 = vst [vmem:[#allocation2 + $0x4] sm:$0x1] %v250_v4 }
  0x3c   :  { %277 = vsyncadd [#allocation6 + $0x4], 16  ;;  %s904_s21 = sld [smem:[#allocation8 + $0x5]] }
  0x42   :  { %s279_s24 = scalar_lea.vmem %s1218_s1, %s904_s21 }
  0x43   :  { %v300_v5 = vld [vmem:[%s279_s24] sm:$0x1] }
  0x44   :  { %301 = vst [vmem:[#allocation2 + $0x5] sm:$0x1] %v300_v5 }
  0x45   :  { %327 = vsyncadd [#allocation6 + $0x5], 16  ;;  %s905_s25 = sld [smem:[#allocation8 + $0x6]] }
  0x4b   :  { %s329_s28 = scalar_lea.vmem %s1218_s1, %s905_s25 }
  0x4c   :  { %v350_v6 = vld [vmem:[%s329_s28] sm:$0x1] }
  0x4d   :  { %351 = vst [vmem:[#allocation2 + $0x6] sm:$0x1] %v350_v6 }
  0x4e   :  { %377 = vsyncadd [#allocation6 + $0x6], 16  ;;  %s906_s29 = sld [smem:[#allocation8 + $0x7]] }
  0x54   :  { %s379_s7 = scalar_lea.vmem %s1218_s1, %s906_s29 }
  0x55   :  { %v400_v7 = vld [vmem:[%s379_s7] sm:$0x1] }
  0x56   :  { %401 = vst [vmem:[#allocation2 + $0x7] sm:$0x1] %v400_v7 }
  0x57   :  { %427 = vsyncadd [#allocation6 + $0x7], 16 }
  0x58   :  { %983 = dma.done.wait [#allocation6], 16 }
  0x59   :  { %984 = vsyncadd [#allocation6], 4294967280 }
  0x5a   :  { %985 = dma.done.wait [#allocation6 + $0x1], 16 }
  0x5b   :  { %986 = vsyncadd [#allocation6 + $0x1], 4294967280 }
  0x5c   :  { %987 = dma.done.wait [#allocation6 + $0x2], 16 }
  0x5d   :  { %988 = vsyncadd [#allocation6 + $0x2], 4294967280 }
  0x5e   :  { %989 = dma.done.wait [#allocation6 + $0x3], 16 }
  0x5f   :  { %990 = vsyncadd [#allocation6 + $0x3], 4294967280 }
  0x60   :  { %991 = dma.done.wait [#allocation6 + $0x4], 16 }
  0x61   :  { %992 = vsyncadd [#allocation6 + $0x4], 4294967280 }
  0x62   :  { %993 = dma.done.wait [#allocation6 + $0x5], 16 }
  0x63   :  { %994 = vsyncadd [#allocation6 + $0x5], 4294967280 }
  0x64   :  { %995 = dma.done.wait [#allocation6 + $0x6], 16 }
  0x65   :  { %996 = vsyncadd [#allocation6 + $0x6], 4294967280 }
  0x66   :  { %997 = dma.done.wait [#allocation6 + $0x7], 16 }
  0x67   :  { %998 = vsyncadd [#allocation6 + $0x7], 4294967280  ;;  %v1002_v8 = vmov 0.0   ;;  %vm1003_vm0 = vmmov 0   ;;  %vm446_vm1 = vcmask 261120   ;;  %v457_v9 = vld [vmem:[%s1219_s2 + $0x18] sm:$0xff]  ;;  %v574_v60 = vlaneseq }
  0x68   :  { %921 = vmatprep.subr.mxu0 %v1002_v8  ;;  %929 = vmatprep.mubr.msk.f32.mxu0 %vm1003_vm0, %v1002_v8  ;;  %v456_v10 = vld [vmem:[%s1219_s2 + $0x10] sm:$0xff]  ;;  %v455_v11 = vld [vmem:[%s1219_s2 + $0x8] sm:$0xff]  ;;  %v445_v12 = vld [vmem:[#allocation2] sm:$0xff]  ;;  %vm534_vm2 = vcmask 0   ;;  %v1004_v59 = vmov -inf   ;;  %vm680_vm3 = vcmask 1040384  }
  0x69   :  { %648 = vmatprep.mubr.f32.mxu1 %v1002_v8  ;;  %922 = vmatpush3.msra.mxu0 %v457_v9  ;;  %v569_v13 = vld [vmem:[%s1222_s5 + $0xf8] sm:$0xff]  ;;  %v447_v14 = vsel %vm446_vm1, %v445_v12, 0.0  ;;  %v568_v15 = vld [vmem:[%s1222_s5 + $0xf0] sm:$0xff]  ;;  %v567_v16 = vld [vmem:[%s1222_s5 + $0xe8] sm:$0xff]  ;;  %535 = vst.msk [vmem:[#allocation4] sm:$0x1] %vm534_vm2, %v1004_v59 }
  0x6a   :  { %923 = vmatprep.subr.mxu0 %v1002_v8  ;;  %584 = vmatprep.subr.mxu1 %v569_v13  ;;  %v566_v17 = vld [vmem:[%s1222_s5 + $0xe0] sm:$0xff]  ;;  %v448_v18 = vrot.slane %v447_v14, 4  ;;  %v565_v19 = vld [vmem:[%s1222_s5 + $0xd8] sm:$0xff]  ;;  %v564_v21 = vld [vmem:[%s1222_s5 + $0xd0] sm:$0xff]  ;;  %536 = vst.msk [vmem:[#allocation5] sm:$0x1] %vm534_vm2, %v1002_v8 }
  0x6b   :  { %924 = vmatpush3.msra.mxu0 %v456_v10  ;;  %585 = vmatpush1.msra.mxu1 %v568_v15  ;;  %v454_v20 = vld [vmem:[%s1219_s2] sm:$0xff]  ;;  %v563_v23 = vld [vmem:[%s1222_s5 + $0xc8] sm:$0xff]  ;;  %v561_v26 = vld [vmem:[%s1222_s5 + $0xb8] sm:$0xff]  ;;  %v575_v61 = vshrl.u32 %v574_v60, 7  ;;  %v1005_v1 = vmov 1966171168  }
  0x6c   :  { %925 = vmatprep.subr.mxu0 %v1002_v8  ;;  %586 = vmatprep.subr.mxu1 %v567_v16  ;;  %v449_v22 = vadd.f32 %v448_v18, %v447_v14  ;;  %v562_v24 = vld [vmem:[%s1222_s5 + $0xc0] sm:$0xff]  ;;  %v560_v27 = vld [vmem:[%s1222_s5 + $0xb0] sm:$0xff]  ;;  %v559_v29 = vld [vmem:[%s1222_s5 + $0xa8] sm:$0xff]  ;;  %v659_v2 = vunpack.c.l.s4 %v1005_v1  ;;  %vm1200_vm4 = vcmp.lt.s32.totalorder %v574_v60, 256  ;;  %v1006_v18 = vmov 0  }
  0x6d   :  { %926 = vmatpush3.msra.mxu0 %v455_v11  ;;  %587 = vmatpush1.msra.mxu1 %v566_v17  ;;  %v558_v30 = vld [vmem:[%s1222_s5 + $0xa0] sm:$0xff]  ;;  %v557_v32 = vld [vmem:[%s1222_s5 + $0x98] sm:$0xff]  ;;  %v556_v33 = vld [vmem:[%s1222_s5 + $0x90] sm:$0xff]  ;;  %v1192_v62 = vsub.s32 0, %v575_v61  ;;  %v580_v0 = vsub.s32 1, %v575_v61 }
  0x6e   :  { %927 = vmatprep.subr.mxu0 %v1002_v8  ;;  %588 = vmatprep.subr.mxu1 %v565_v19  ;;  %v450_v25 = vrot.slane %v449_v22, 2  ;;  %v555_v35 = vld [vmem:[%s1222_s5 + $0x88] sm:$0xff]  ;;  %v554_v36 = vld [vmem:[%s1222_s5 + $0x80] sm:$0xff]  ;;  %v553_v37 = vld [vmem:[%s1222_s5 + $0x78] sm:$0xff]  ;;  %v660_v5 = vunpack.c.0.s8 %v659_v2 }
  0x6f   :  { %928 = vmatpush3.msra.mxu0 %v454_v20  ;;  %589 = vmatpush1.msra.mxu1 %v564_v21  ;;  %v552_v38 = vld [vmem:[%s1222_s5 + $0x70] sm:$0xff]  ;;  %v551_v39 = vld [vmem:[%s1222_s5 + $0x68] sm:$0xff]  ;;  %v550_v40 = vld [vmem:[%s1222_s5 + $0x60] sm:$0xff] }
  0x70   :  { %590 = vmatprep.subr.mxu1 %v563_v23  ;;  %v451_v28 = vadd.f32 %v450_v25, %v449_v22  ;;  %v549_v41 = vld [vmem:[%s1222_s5 + $0x58] sm:$0xff]  ;;  %v548_v42 = vld [vmem:[%s1222_s5 + $0x50] sm:$0xff]  ;;  %v547_v43 = vld [vmem:[%s1222_s5 + $0x48] sm:$0xff]  ;;  %v663_v10 = vsub.s32 %v660_v5, %v575_v61  ;;  %939 = vset.pattern.permute.xlu0 %v1006_v18 }
  0x71   :  { %591 = vmatpush1.msra.mxu1 %v562_v24  ;;  %v546_v44 = vld [vmem:[%s1222_s5 + $0x40] sm:$0xff]  ;;  %v545_v45 = vld [vmem:[%s1222_s5 + $0x38] sm:$0xff]  ;;  %v544_v46 = vld [vmem:[%s1222_s5 + $0x30] sm:$0xff]  ;;  %940 = vset.pattern.permute.xlu1 %v1006_v18 }
  0x72   :  { %592 = vmatprep.subr.mxu1 %v561_v26  ;;  %v452_v31 = vrot.slane %v451_v28, 1  ;;  %v543_v47 = vld [vmem:[%s1222_s5 + $0x28] sm:$0xff]  ;;  %v542_v48 = vld [vmem:[%s1222_s5 + $0x20] sm:$0xff]  ;;  %v541_v49 = vld [vmem:[%s1222_s5 + $0x18] sm:$0xff] }
  0x73   :  { %593 = vmatpush1.msra.mxu1 %v560_v27  ;;  %v540_v50 = vld [vmem:[%s1222_s5 + $0x10] sm:$0xff]  ;;  %v539_v51 = vld [vmem:[%s1222_s5 + $0x8] sm:$0xff]  ;;  %v538_v52 = vld [vmem:[%s1222_s5] sm:$0xff] }
  0x74   :  { %594 = vmatprep.subr.mxu1 %v559_v29  ;;  %v453_v34 = vadd.f32 %v452_v31, %v451_v28  ;;  %v458_v53 = vld [vmem:[%s1220_s3] sm:$0x1]  ;;  %v679_v19 = vld [vmem:[#allocation4] sm:$0x1] }
  0x75   :  { %595 = vmatpush1.msra.mxu1 %v558_v30  ;;  %v572_v63 = vld [vmem:[%s1221_s4] sm:$0x3]  ;;  %s1007_s4 = smov [#allocation9]  }
  0x76   :  { %596 = vmatprep.subr.mxu1 %v557_v32  ;;  %930 = vmatmul.mubr.msk.f32.vlgmr.msra.gmra.mxu0 %vm446_vm1, %v453_v34  ;;  %v577_v3 = vrot.slane %v572_v63, %v1192_v62  ;;  %v581_v4 = vrot.slane %v572_v63, %v580_v0  ;;  %s742_s27 = sshll.u32 %s1007_s4, 4  ;;  %s743_s27 = int_to_ptr.vmem [resolvable:$true] %s742_s27 }
  0x77   :  { %597 = vmatpush1.msra.mxu1 %v556_v33  ;;  %s961_s28 = scalar_lea.vmem %s743_s27, 32  ;;  %p966_p6 = scmp.lt.s32.totalorder %s743_s27, %s743_s27 }
  0x78   :  { %598 = vmatprep.subr.mxu1 %v555_v35  ;;  %p962_p5 = scmp.ne.s32.totalorder %s743_s27, %s961_s28  ;;  %p967_p7 = scmp.lt.s32.totalorder %s961_s28, %s961_s28 }
  0x79   :  { %599 = vmatpush1.msra.mxu1 %v554_v36  ;;  %v687_v36 = vld [vmem:[#allocation5] sm:$0x1] }
  0x7a   :  { %600 = vmatprep.subr.mxu1 %v553_v37  ;;  %p968_p8 = por %p967_p7, %p966_p6 }
  0x7b   :  { %601 = vmatpush1.msra.mxu1 %v552_v38 }
  0x7c   :  { %602 = vmatprep.subr.mxu1 %v551_v39  ;;  %p969_p9 = pnand %p968_p8, %p962_p5 }
  0x7d   :  { %603 = vmatpush1.msra.mxu1 %v550_v40 }
  0x7e   :  { %604 = vmatprep.subr.mxu1 %v549_v41 }
  0x7f   :  { %605 = vmatpush1.msra.mxu1 %v548_v42 }
  0x80   :  { %606 = vmatprep.subr.mxu1 %v547_v43 }
  0x81   :  { %607 = vmatpush1.msra.mxu1 %v546_v44 }
  0x82   :  { %608 = vmatprep.subr.mxu1 %v545_v45 }
  0x83   :  { %609 = vmatpush1.msra.mxu1 %v544_v46 }
  0x84   :  { %610 = vmatprep.subr.mxu1 %v543_v47 }
  0x85   :  { %611 = vmatpush1.msra.mxu1 %v542_v48 }
  0x86   :  { %612 = vmatprep.subr.mxu1 %v541_v49 }
  0x87   :  { %613 = vmatpush1.msra.mxu1 %v540_v50 }
  0x88   :  { %614 = vmatprep.subr.mxu1 %v539_v51 }
  0x89   :  { %615 = vmatpush1.msra.mxu1 %v538_v52 }
 0x136   :  { %v528_v54 = vpop.f32.mrf.mxu0 }
 0x137   :  { %v529_v55 = vadd.f32 %v528_v54, %v458_v53 }
 0x138   :  { %v931_v56 = vpop.f32.mrf.mxu0 }
 0x139   :  { %v532_v57 = vmax.f32 %v529_v55, 0.0 }
 0x13b   :  { %533 = vst [vmem:[#allocation3] sm:$0x1] %v532_v57 }
 0x142   :  { %v537_v58 = vld [vmem:[#allocation3] sm:$0x1] }
 0x143   :  { %649 = vmatmul.mubr.f32.vlgmr.msra.gmra.mxu1 %v537_v58 }
 0x203   :  { %v650_v6 = vpop.f32.mrf.mxu1 }
 0x204   :  { %v651_v7 = vadd.f32 %v650_v6, %v577_v3 }
 0x205   :  { %v652_v9 = vpop.f32.mrf.mxu1 }
 0x206   :  { %v653_v8 = vadd.f32 %v652_v9, %v581_v4  ;;  %v681_v12 = vsel %vm680_vm3, %v651_v7, -inf }
 0x208   :  { %v657_v11 = vcombine.low %v651_v7, %v653_v8  ;;  %v682_v13 = vsel %vm680_vm3, %v653_v8, -inf }
 0x209   :  { %v683_v14 = vmax.f32 %v681_v12, %v682_v13 }
 0x20a   :  { %v664_v15 = vrot.slane %v657_v11, %v663_v10 }
 0x20b   :  { %684 = vmax.xlane.f32.xlu0 %v683_v14 }
 0x20c   :  { %v671_v17 = vrot.slane %v664_v15, %v663_v10 }
 0x20e   :  { %678 = vst.msk [vmem:[#allocation9] sm:$0x3] %vm1200_vm4, %v671_v17 }
 0x215   :  { %v724_v47 = vld [vmem:[#allocation9] sm:$0x3] }
 0x294   :  { %v685_v20 = vpop.xlane.xlu0 %684 }
 0x295   :  { %v686_v21 = vmax.f32 %v679_v19, %v685_v20 }
 0x297   :  { %v688_v22 = vsub.f32 %v679_v19, %v686_v21  ;;  %715 = vst.msk [vmem:[#allocation4] sm:$0x1] %vm534_vm2, %v686_v21  ;;  %694 = vperm.xlu0 %939, %v686_v21  }
 0x299   :  { %v689_v34 = vmul.f32 1.442695, %v688_v22 }
 0x29e   :  { %v719_v43 = vld [vmem:[#allocation4] sm:$0x1] }
 0x312   :  { %v695_v23 = vpop.permute.xlu0 %694 }
 0x313   :  { %v700_v24 = vrot.slane %v695_v23, %v1192_v62 }
 0x315   :  { %v701_v25 = vsub.f32 %v651_v7, %v700_v24  ;;  %v702_v26 = vsub.f32 %v653_v8, %v700_v24 }
 0x317   :  { %v703_v27 = vmul.f32 1.442695, %v701_v25  ;;  %v705_v28 = vmul.f32 1.442695, %v702_v26 }
 0x319   :  { %941 = vpow2.f32 %v703_v27 }
 0x31a   :  { %943 = vpow2.f32 %v705_v28 }
 0x31b   :  { %945 = vpow2.f32 %v689_v34 }
 0x326   :  { %v942_v29 = vpop.eup %941 }
 0x327   :  { %v944_v30 = vpop.eup %943  ;;  %v707_v31 = vsel %vm680_vm3, %v942_v29, 0.0 }
 0x328   :  { %v708_v32 = vsel %vm680_vm3, %v944_v30, 0.0  ;;  %v946_v35 = vpop.eup %945 }
 0x329   :  { %v709_v33 = vadd.f32 %v708_v32, %v707_v31  ;;  %v691_v37 = vmul.f32 %v946_v35, %v687_v36 }
 0x32b   :  { %710 = vadd.xlane.f32.xlu1 %v709_v33 }
 0x3b4   :  { %v711_v38 = vpop.xlane.xlu1 %710 }
 0x3b5   :  { %v712_v39 = vadd.f32 %v711_v38, %v691_v37 }
 0x3b7   :  { %714 = vst.msk [vmem:[#allocation5] sm:$0x1] %vm534_vm2, %v712_v39 }
 0x3be   :  { %v720_v40 = vld [vmem:[#allocation5] sm:$0x1] }
 0x3bf   :  { %947 = vlog2.f32 %v720_v40 }
 0x3cc   :  { %v948_v41 = vpop.eup %947 }
 0x3cd   :  { %v722_v42 = vmul.f32 0.6931472, %v948_v41 }
 0x3cf   :  { %v723_v44 = vadd.f32 %v722_v42, %v719_v43 }
 0x3d1   :  { %727 = vperm.xlu1 %940, %v723_v44  }
 0x44c   :  { %v728_v45 = vpop.permute.xlu1 %727 }
 0x44d   :  { %v733_v46 = vrot.slane %v728_v45, %v1192_v62 }
 0x44f   :  { %v734_v48 = vsub.f32 %v724_v47, %v733_v46 }
 0x451   :  { %735 = vst.msk [vmem:[#allocation9] sm:$0x3] %vm1200_vm4, %v734_v48 }
 0x452   :  { %972 = shalt.err (!%p969_p9)
}
 0x453   :  { %745 = dma.vmem_to_hbm [thread:$0]  %s743_s27, 32, %s1223_s6, [#allocation10]  }
 0x454   :  { %999 = dma.done.wait [#allocation10], 32  }
 0x455   :  { %1000 = vsyncadd [#allocation10], 4294967264 }
 0x456   :  { %749 = vsyncpa [#allocation10], 1 }
 0x457   :  { %750 = vsyncmov [#allocation6] }
 0x45a   :  { %s751_s2 = vpop.sfrf %750 }
 0x45b   :  { %p908_p10 = scmp.ne.s32.totalorder %s751_s2, 0 }
 0x45d   :  { %755 = shalt.err (%p908_p10)  }
 0x45e   :  { %757 = vsyncmov [#allocation6 + $0x1] }
 0x461   :  { %s758_s30 = vpop.sfrf %757 }
 0x462   :  { %p909_p11 = scmp.ne.s32.totalorder %s758_s30, 0 }
 0x464   :  { %762 = shalt.err (%p909_p11)  }
 0x465   :  { %764 = vsyncmov [#allocation6 + $0x2] }
 0x468   :  { %s765_s7 = vpop.sfrf %764 }
 0x469   :  { %p910_p12 = scmp.ne.s32.totalorder %s765_s7, 0 }
 0x46b   :  { %769 = shalt.err (%p910_p12)  }
 0x46c   :  { %771 = vsyncmov [#allocation6 + $0x3] }
 0x46f   :  { %s772_s1 = vpop.sfrf %771 }
 0x470   :  { %p911_p13 = scmp.ne.s32.totalorder %s772_s1, 0 }
 0x472   :  { %776 = shalt.err (%p911_p13)  }
 0x473   :  { %778 = vsyncmov [#allocation6 + $0x4] }
 0x476   :  { %s779_s6 = vpop.sfrf %778 }
 0x477   :  { %p912_p0 = scmp.ne.s32.totalorder %s779_s6, 0 }
 0x479   :  { %783 = shalt.err (%p912_p0)  }
 0x47a   :  { %785 = vsyncmov [#allocation6 + $0x5] }
 0x47d   :  { %s786_s8 = vpop.sfrf %785 }
 0x47e   :  { %p913_p1 = scmp.ne.s32.totalorder %s786_s8, 0 }
 0x480   :  { %790 = shalt.err (%p913_p1)  }
 0x481   :  { %792 = vsyncmov [#allocation6 + $0x6] }
 0x484   :  { %s793_s9 = vpop.sfrf %792 }
 0x485   :  { %p914_p2 = scmp.ne.s32.totalorder %s793_s9, 0 }
 0x487   :  { %797 = shalt.err (%p914_p2)  }
 0x488   :  { %799 = vsyncmov [#allocation6 + $0x7] }
 0x48b   :  { %s800_s10 = vpop.sfrf %799 }
 0x48c   :  { %p915_p3 = scmp.ne.s32.totalorder %s800_s10, 0 }
 0x48e   :  { %804 = shalt.err (%p915_p3)  }

</bundles_post_ra>
